<compile_context>
chip_gen: v6e
topology: v6e:2x2x1
jax: 0.10.0
libtpu: 0.0.40
codegen_flags: <defaults>
</compile_context>

<pallas_src>
import jax
import jax.numpy as jnp
from jax.experimental import pallas as pl
from jax.experimental.pallas import tpu as pltpu


def _placement_matrices(h: int, w: int, dtype):
    """Block-diagonal one-hot placement matrices (built once in the wrapper)."""
    eh, ew = 2 * h - 1, 2 * w - 1
    # A_full[(i, p), (i2, y)] = [i == i2] * [p == y + (h - 1 - i)]
    i = jnp.arange(h)[:, None, None, None]
    p = jnp.arange(eh)[None, :, None, None]
    i2 = jnp.arange(h)[None, None, :, None]
    y = jnp.arange(h)[None, None, None, :]
    a_full = ((i == i2) & (p == y + (h - 1 - i))).astype(dtype).reshape(h * eh, h * h)
    # B_full[(x, j2), (q, j)] = [j == j2] * [q == x + (w - 1 - j)]
    x = jnp.arange(w)[:, None, None, None]
    j2 = jnp.arange(w)[None, :, None, None]
    q = jnp.arange(ew)[None, None, :, None]
    j = jnp.arange(w)[None, None, None, :]
    b_full = ((j2 == j) & (q == x + (w - 1 - j))).astype(dtype).reshape(w * w, w * ew)
    return a_full, b_full


def _align_kernel(a_ref, x_ref, b_ref, o_ref):
    # a_ref: (h*eh, h*h)   block-diag row placement (constant across the grid)
    # x_ref: (h*h, w*w)    per-batch correlation; rows (i,y), cols (x,j)
    # b_ref: (w*w, w*ew)   block-diag col placement; rows (x,j), cols (q,j)
    # o_ref: (h*eh, w*ew)  per-batch result; rows (i,p), cols (q,j)
    x = x_ref[...]
    t = jnp.dot(a_ref[...], x, preferred_element_type=jnp.float32)
    t = t.astype(x.dtype)  # exact: each A row is one-hot (pure selection)
    y = jnp.dot(t, b_ref[...], preferred_element_type=jnp.float32)
    o_ref[...] = y.astype(o_ref.dtype)


def correlation_align(correlation_tensor: jnp.ndarray) -> jnp.ndarray:
    """Pallas implementation of CorrelationAlign.forward (NCHW in, NCHW out)."""
    b, c, h, w = correlation_tensor.shape
    assert c == h * w, "channel dim must equal h*w for a correlation tensor"
    eh, ew = 2 * h - 1, 2 * w - 1
    dt = correlation_tensor.dtype

    a_full, b_full = _placement_matrices(h, w, dt)

    # glue on the SMALL tensor (innermost dim preserved):
    # (b, y*w+x, i, j) -> (b, i, y, x, j) -> (b, (i,y), (x,j))
    x_k = (correlation_tensor.reshape(b, h, w, h, w)
           .transpose(0, 3, 1, 2, 4)
           .reshape(b, h * h, w * w))

    out_k = pl.pallas_call(
        _align_kernel,
        out_shape=jax.ShapeDtypeStruct((b, h * eh, w * ew), dt),
        grid=(b,),
        in_specs=[
            pl.BlockSpec((h * eh, h * h), lambda bb: (0, 0)),                    # A_full
            pl.BlockSpec((pl.Squeezed(), h * h, w * w), lambda bb: (bb, 0, 0)),  # X
            pl.BlockSpec((w * w, w * ew), lambda bb: (0, 0)),                    # B_full
        ],
        out_specs=pl.BlockSpec((pl.Squeezed(), h * eh, w * ew), lambda bb: (bb, 0, 0)),
        compiler_params=pltpu.CompilerParams(dimension_semantics=("parallel",)),
    )(a_full, x_k, b_full)

    # glue: (b, (i,p), (q,j)) -> (b, p*ew + q, i, j)  (innermost dim preserved)
    out = (out_k.reshape(b, h, eh, ew, w)
           .transpose(0, 2, 3, 1, 4)
           .reshape(b, eh * ew, h, w))
    return out


def _reference(correlation_tensor: jnp.ndarray) -> jnp.ndarray:
    """Direct JAX transcription of the PyTorch forward (for verification)."""
    b, c, h, w = correlation_tensor.shape
    eh, ew = 2 * h - 1, 2 * w - 1
    resized = correlation_tensor.reshape(b, h, w, h, w)
    out = jnp.zeros((b, eh, ew, h, w), correlation_tensor.dtype)
    for i in range(h):
        for j in range(w):
            out = out.at[:, eh - h - i:eh - i, ew - w - j:ew - j, i, j].set(
                resized[:, :, :, i, j]
            )
    return out.reshape(b, -1, h, w)


if __name__ == "__main__":
    key = jax.random.PRNGKey(0)
    b, h, w = 2, 6, 6                       # correlation tensor: channels = h*w
    corr = jax.random.normal(key, (b, h * w, h, w), dtype=jnp.float32)

    out = jax.jit(correlation_align)(corr)
    out = jax.block_until_ready(out)

    ref = _reference(corr)
    assert out.shape == (b, (2 * h - 1) * (2 * w - 1), h, w)
    assert jnp.allclose(out, ref, atol=1e-5, rtol=1e-5)

    print("KERNEL_OK")
</pallas_src>

<mosaic_0001>
module attributes {stable_mosaic.version = 11 : i64} {
  func.func @_align_kernel(%arg0: i32, %arg1: memref<66x36xf32, #tpu.memory_space<vmem>>, %arg2: memref<1x36x36xf32, #tpu.memory_space<vmem>>, %arg3: memref<36x66xf32, #tpu.memory_space<vmem>>, %arg4: memref<1x66x66xf32, #tpu.memory_space<vmem>>) attributes {dimension_semantics = [#tpu.dimension_semantics<parallel>], iteration_bounds = array<i64: 2>, scalar_prefetch = 0 : i64, scratch_operands = 0 : i64, tpu.core_type = #tpu.core_type<tc>, window_params = [{pipeline_mode = #tpu.pipeline_mode<synchronous>, transform_indices = @transform_0, window_bounds = array<i64: 66, 36>}, {transform_indices = @transform_1, window_bounds = array<i64: 1, 36, 36>}, {pipeline_mode = #tpu.pipeline_mode<synchronous>, transform_indices = @transform_2, window_bounds = array<i64: 36, 66>}, {transform_indices = @transform_3, window_bounds = array<i64: 1, 66, 66>}]} {
    %c0 = arith.constant 0 : index
    %c0_0 = arith.constant 0 : index
    %c0_1 = arith.constant 0 : index
    %0 = vector.load %arg2[%c0, %c0_0, %c0_1] : memref<1x36x36xf32, #tpu.memory_space<vmem>>, vector<1x36x36xf32>
    %1 = vector.shape_cast %0 : vector<1x36x36xf32> to vector<36x36xf32>
    %c0_2 = arith.constant 0 : index
    %c0_3 = arith.constant 0 : index
    %2 = vector.load %arg1[%c0_2, %c0_3] : memref<66x36xf32, #tpu.memory_space<vmem>>, vector<66x36xf32>
    %cst = arith.constant dense<0.000000e+00> : vector<66x36xf32>
    %3 = tpu.matmul %2, %1, %cst {dimension_numbers = #tpu.dot_dimension_numbers<[1], [0], [0], [1], [0, 0, 1, 1], [], []>} : vector<66x36xf32>, vector<36x36xf32>, vector<66x36xf32> -> vector<66x36xf32>
    %c0_4 = arith.constant 0 : index
    %c0_5 = arith.constant 0 : index
    %4 = vector.load %arg3[%c0_4, %c0_5] : memref<36x66xf32, #tpu.memory_space<vmem>>, vector<36x66xf32>
    %cst_6 = arith.constant dense<0.000000e+00> : vector<66x66xf32>
    %5 = tpu.matmul %3, %4, %cst_6 {dimension_numbers = #tpu.dot_dimension_numbers<[1], [0], [0], [1], [0, 0, 1, 1], [], []>} : vector<66x36xf32>, vector<36x66xf32>, vector<66x66xf32> -> vector<66x66xf32>
    %c0_7 = arith.constant 0 : index
    %c0_8 = arith.constant 0 : index
    %c0_9 = arith.constant 0 : index
    %6 = vector.load %arg4[%c0_7, %c0_8, %c0_9] : memref<1x66x66xf32, #tpu.memory_space<vmem>>, vector<1x66x66xf32>
    %7 = vector.shape_cast %6 : vector<1x66x66xf32> to vector<66x66xf32>
    %8 = vector.shape_cast %5 : vector<66x66xf32> to vector<1x66x66xf32>
    tpu.vector_store %arg4[%c0_7, %c0_8, %c0_9], %8 {strides = array<i32>} : memref<1x66x66xf32, #tpu.memory_space<vmem>>, vector<1x66x66xf32>,
    return
  }
  func.func @transform_0(%arg0: i32) -> (i32, i32) {
    %c0_i32 = arith.constant 0 : i32
    %c0_i32_0 = arith.constant 0 : i32
    %c0_i32_1 = arith.constant 0 : i32
    return %c0_i32, %c0_i32_0 : i32, i32
  }
  func.func @transform_1(%arg0: i32) -> (i32, i32, i32) {
    %c0_i32 = arith.constant 0 : i32
    %c0_i32_0 = arith.constant 0 : i32
    %c0_i32_1 = arith.constant 0 : i32
    return %arg0, %c0_i32, %c0_i32_0 : i32, i32, i32
  }
  func.func @transform_2(%arg0: i32) -> (i32, i32) {
    %c0_i32 = arith.constant 0 : i32
    %c0_i32_0 = arith.constant 0 : i32
    %c0_i32_1 = arith.constant 0 : i32
    return %c0_i32, %c0_i32_0 : i32, i32
  }
  func.func @transform_3(%arg0: i32) -> (i32, i32, i32) {
    %c0_i32 = arith.constant 0 : i32
    %c0_i32_0 = arith.constant 0 : i32
    %c0_i32_1 = arith.constant 0 : i32
    return %arg0, %c0_i32, %c0_i32_0 : i32, i32, i32
  }
}

</mosaic_0001>

<bundles_post_ra>
// kernel: correlation_align.1
= control target key start
LH: loop header
LB: loop body
LE: loop exit
PB: predicated region body
PF: predicated region fallthrough
CT: control target
= control target key end

     0   :  { %s711_s12 = smov 0   ;;  %s846_s0 = inlined_call_operand.vmem [shape: f32[66,36], index: 0, kind: input, shape index: {}]   ;;  %s847_s1 = inlined_call_operand.vmem [shape: f32[2,36,36], index: 1, kind: input, shape index: {}]   ;;  %s848_s2 = inlined_call_operand.vmem [shape: f32[36,66], index: 2, kind: input, shape index: {}]   ;;  %s849_s3 = inlined_call_operand.vmem [shape: f32[2,66,66], index: 3, kind: output, shape index: {}]  }
   0x1 LB: > { %s538_s13 = sadd.s32 4294967295, %s687_s12   ;;  %p542_p0 = scmp.ge.s32.totalorder %s687_s12, 1  ;;  %s687_s12 = sphi %s711_s12, %s13_s12  }
   0x2   : > { %p137_p1 = scmp.lt.s32.totalorder %s687_s12, 3 }
   0x4   : > { %p138_p2 = pnand %p542_p0, %p137_p1 }
   0x5   : > { %p161_p3 = scmp.lt.s32.totalorder (!%p138_p2), %s538_s13, 1 }
   0x6   : > { %141 = sbr.rel (%p138_p2) target bundleno = 445 (0x1bd), region = 32 }
   0xb   : > { %v689_v0 = vmov 0.0   ;;  %vm690_vm0 = vmmov 0   ;;  %s851_s13 = smov (!%p161_p3, %s538_s13), 1  ;;  %vm213_vm1 = vcmask 1043456   ;;  %v331_v1 = vld [vmem:[%s848_s2 + $0x20] sm:$0xf] }
   0xc   : > { %595 = vmatprep.subr.mxu0 %v689_v0  ;;  %605 = vmatprep.mubr.msk.f32.mxu0 %vm690_vm0, %v689_v0  ;;  %s669_s16 = smul.u32 40, %s851_s13  ;;  %v330_v2 = vld [vmem:[%s848_s2 + $0x18] sm:$0xff]  ;;  %v329_v3 = vld [vmem:[%s848_s2 + $0x10] sm:$0xff]  ;;  %v328_v6 = vld [vmem:[%s848_s2 + $0x8] sm:$0xff]  ;;  %vm185_vm2 = vcmask 293888   ;;  %vm472_vm3 = vcmask 539648  }
   0xd   : > { %632 = vmatprep.subr.mxu1 %v689_v0  ;;  %642 = vmatprep.mubr.msk.f32.mxu1 %vm690_vm0, %v689_v0  ;;  %v176_v10 = vld [vmem:[%s846_s0] sm:$0xff]  ;;  %v177_v11 = vld [vmem:[%s846_s0 + $0x8] sm:$0xff]  ;;  %v178_v12 = vld [vmem:[%s846_s0 + $0x10] sm:$0xff]  ;;  %s670_s21 = smul.u32 72, %s851_s13  ;;  %vm481_vm4 = vcmask 533504  }
   0xe   : > { %633 = vmatpush3.msk.msra.mxu1 %vm213_vm1, %v331_v1  ;;  %s165_s23 = scalar_lea.vmem %s847_s1, %s669_s16  ;;  %v179_v13 = vld [vmem:[%s846_s0 + $0x18] sm:$0xff]  ;;  %v180_v14 = vld [vmem:[%s846_s0 + $0x20] sm:$0xff]  ;;  %v181_v15 = vld [vmem:[%s846_s0 + $0x28] sm:$0xff] }
   0xf   : > { %634 = vmatprep.subr.mxu1 %v689_v0  ;;  %v175_v4 = vld [vmem:[%s165_s23 + $0x20] sm:$0xf]  ;;  %v174_v5 = vld [vmem:[%s165_s23 + $0x18] sm:$0xff]  ;;  %v173_v7 = vld [vmem:[%s165_s23 + $0x10] sm:$0xff]  ;;  %s170_s24 = scalar_lea.vmem %s849_s3, %s670_s21 }
  0x10   : > { %635 = vmatpush3.msra.mxu1 %v330_v2  ;;  %596 = vmatpush3.msk.msra.mxu0 %vm213_vm1, %v175_v4  ;;  %v172_v8 = vld [vmem:[%s165_s23 + $0x8] sm:$0xff]  ;;  %v171_v9 = vld [vmem:[%s165_s23] sm:$0xff]  ;;  %v182_v16 = vld [vmem:[%s846_s0 + $0x30] sm:$0xff] }
  0x11   : > { %636 = vmatprep.subr.mxu1 %v689_v0  ;;  %597 = vmatprep.subr.mxu0 %v689_v0  ;;  %v183_v17 = vld [vmem:[%s846_s0 + $0x38] sm:$0xff]  ;;  %v184_v18 = vld [vmem:[%s846_s0 + $0x40] sm:$0x3] }
  0x12   : > { %637 = vmatpush3.msra.mxu1 %v329_v3  ;;  %598 = vmatpush3.msra.mxu0 %v174_v5  ;;  %v327_v19 = vld [vmem:[%s848_s2] sm:$0xff] }
  0x13   : > { %638 = vmatprep.subr.mxu1 %v689_v0  ;;  %599 = vmatprep.subr.mxu0 %v689_v0 }
  0x14   : > { %639 = vmatpush3.msra.mxu1 %v328_v6  ;;  %600 = vmatpush3.msra.mxu0 %v173_v7 }
  0x15   : > { %640 = vmatprep.subr.mxu1 %v689_v0  ;;  %601 = vmatprep.subr.mxu0 %v689_v0 }
  0x16   : > { %602 = vmatpush3.msra.mxu0 %v172_v8  ;;  %641 = vmatpush3.msra.mxu1 %v327_v19 }
  0x17   : > { %603 = vmatprep.subr.mxu0 %v689_v0 }
  0x18   : > { %604 = vmatpush3.msra.mxu0 %v171_v9 }
  0x19   : > { %606 = vmatmul.mubr.msk.f32.vlgmr.msra.gmra.mxu0 %vm185_vm2, %v176_v10 }
  0x1a   : > { %608 = vmatprep.mubr.msk.f32.mxu0 %vm690_vm0, %v689_v0 }
  0x1d   : > { %609 = vmatmul.mubr.msk.f32.gmra.mxu0 %vm185_vm2, %v177_v11 }
  0x1e   : > { %611 = vmatprep.mubr.msk.f32.mxu0 %vm690_vm0, %v689_v0 }
  0x21   : > { %612 = vmatmul.mubr.msk.f32.gmra.mxu0 %vm185_vm2, %v178_v12 }
  0x22   : > { %614 = vmatprep.mubr.msk.f32.mxu0 %vm690_vm0, %v689_v0 }
  0x25   : > { %615 = vmatmul.mubr.msk.f32.gmra.mxu0 %vm185_vm2, %v179_v13 }
  0x26   : > { %617 = vmatprep.mubr.msk.f32.mxu0 %vm690_vm0, %v689_v0 }
  0x29   : > { %618 = vmatmul.mubr.msk.f32.gmra.mxu0 %vm185_vm2, %v180_v14 }
  0x2a   : > { %620 = vmatprep.mubr.msk.f32.mxu0 %vm690_vm0, %v689_v0 }
  0x2d   : > { %621 = vmatmul.mubr.msk.f32.gmra.mxu0 %vm185_vm2, %v181_v15 }
  0x2e   : > { %623 = vmatprep.mubr.msk.f32.mxu0 %vm690_vm0, %v689_v0 }
  0x31   : > { %624 = vmatmul.mubr.msk.f32.gmra.mxu0 %vm185_vm2, %v182_v16 }
  0x32   : > { %626 = vmatprep.mubr.msk.f32.mxu0 %vm690_vm0, %v689_v0 }
  0x35   : > { %627 = vmatmul.mubr.msk.f32.gmra.mxu0 %vm185_vm2, %v183_v17 }
  0x36   : > { %629 = vmatprep.mubr.msk.f32.mxu0 %vm690_vm0, %v689_v0 }
  0x39   : > { %630 = vmatmul.mubr.msk.f32.gmra.mxu0 %vm185_vm2, %v184_v18 }
  0xd9   : > { %v283_v20 = vpop.f32.mrf.mxu0 }
  0xda   : > { %643 = vmatmul.mubr.msk.f32.vlgmr.msra.gmra.mxu1 %vm185_vm2, %v283_v20 }
  0xdb   : > { %v607_v21 = vpop.f32.mrf.mxu0  ;;  %645 = vmatprep.mubr.msk.f32.mxu1 %vm690_vm0, %v689_v0 }
  0xdd   : > { %v288_v22 = vpop.f32.mrf.mxu0 }
  0xde   : > { %646 = vmatmul.mubr.msk.f32.gmra.mxu1 %vm185_vm2, %v288_v22 }
  0xdf   : > { %v610_v23 = vpop.f32.mrf.mxu0  ;;  %648 = vmatprep.mubr.msk.f32.mxu1 %vm690_vm0, %v689_v0 }
  0xe1   : > { %v293_v24 = vpop.f32.mrf.mxu0 }
  0xe2   : > { %649 = vmatmul.mubr.msk.f32.gmra.mxu1 %vm185_vm2, %v293_v24 }
  0xe3   : > { %v613_v25 = vpop.f32.mrf.mxu0  ;;  %651 = vmatprep.mubr.msk.f32.mxu1 %vm690_vm0, %v689_v0 }
  0xe5   : > { %v298_v26 = vpop.f32.mrf.mxu0 }
  0xe6   : > { %652 = vmatmul.mubr.msk.f32.gmra.mxu1 %vm185_vm2, %v298_v26 }
  0xe7   : > { %v616_v27 = vpop.f32.mrf.mxu0  ;;  %654 = vmatprep.mubr.msk.f32.mxu1 %vm690_vm0, %v689_v0 }
  0xe9   : > { %v303_v28 = vpop.f32.mrf.mxu0 }
  0xea   : > { %655 = vmatmul.mubr.msk.f32.gmra.mxu1 %vm185_vm2, %v303_v28 }
  0xeb   : > { %v619_v29 = vpop.f32.mrf.mxu0  ;;  %657 = vmatprep.mubr.msk.f32.mxu1 %vm690_vm0, %v689_v0 }
  0xed   : > { %v308_v30 = vpop.f32.mrf.mxu0 }
  0xee   : > { %658 = vmatmul.mubr.msk.f32.gmra.mxu1 %vm185_vm2, %v308_v30 }
  0xef   : > { %v622_v31 = vpop.f32.mrf.mxu0  ;;  %660 = vmatprep.mubr.msk.f32.mxu1 %vm690_vm0, %v689_v0 }
  0xf1   : > { %v313_v32 = vpop.f32.mrf.mxu0 }
  0xf2   : > { %661 = vmatmul.mubr.msk.f32.gmra.mxu1 %vm185_vm2, %v313_v32 }
  0xf3   : > { %v625_v33 = vpop.f32.mrf.mxu0  ;;  %663 = vmatprep.mubr.msk.f32.mxu1 %vm690_vm0, %v689_v0 }
  0xf5   : > { %v318_v34 = vpop.f32.mrf.mxu0 }
  0xf6   : > { %664 = vmatmul.mubr.msk.f32.gmra.mxu1 %vm185_vm2, %v318_v34 }
  0xf7   : > { %v628_v35 = vpop.f32.mrf.mxu0  ;;  %666 = vmatprep.mubr.msk.f32.mxu1 %vm690_vm0, %v689_v0 }
  0xf9   : > { %v323_v36 = vpop.f32.mrf.mxu0 }
  0xfa   : > { %667 = vmatmul.mubr.msk.f32.gmra.mxu1 %vm185_vm2, %v323_v36 }
  0xfb   : > { %v631_v37 = vpop.f32.mrf.mxu0 }
 0x19a   : > { %v428_v38 = vpop.f32.mrf.mxu1 }
 0x19b   : > { %473 = vst.msk [vmem:[%s170_s24] sm:$0xff] %vm472_vm3, %v428_v38 }
 0x19c   : > { %v644_v39 = vpop.f32.mrf.mxu1 }
 0x19e   : > { %v433_v40 = vpop.f32.mrf.mxu1 }
 0x19f   : > { %474 = vst.msk [vmem:[%s170_s24 + $0x8] sm:$0xff] %vm472_vm3, %v433_v40 }
 0x1a0   : > { %v647_v41 = vpop.f32.mrf.mxu1 }
 0x1a2   : > { %v438_v42 = vpop.f32.mrf.mxu1 }
 0x1a3   : > { %475 = vst.msk [vmem:[%s170_s24 + $0x10] sm:$0xff] %vm472_vm3, %v438_v42 }
 0x1a4   : > { %v650_v43 = vpop.f32.mrf.mxu1 }
 0x1a6   : > { %v443_v44 = vpop.f32.mrf.mxu1 }
 0x1a7   : > { %476 = vst.msk [vmem:[%s170_s24 + $0x18] sm:$0xff] %vm472_vm3, %v443_v44 }
 0x1a8   : > { %v653_v45 = vpop.f32.mrf.mxu1 }
 0x1aa   : > { %v448_v46 = vpop.f32.mrf.mxu1 }
 0x1ab   : > { %477 = vst.msk [vmem:[%s170_s24 + $0x20] sm:$0xff] %vm472_vm3, %v448_v46 }
 0x1ac   : > { %v656_v47 = vpop.f32.mrf.mxu1 }
 0x1ae   : > { %v453_v48 = vpop.f32.mrf.mxu1 }
 0x1af   : > { %478 = vst.msk [vmem:[%s170_s24 + $0x28] sm:$0xff] %vm472_vm3, %v453_v48 }
 0x1b0   : > { %v659_v49 = vpop.f32.mrf.mxu1 }
 0x1b2   : > { %v458_v50 = vpop.f32.mrf.mxu1 }
 0x1b3   : > { %479 = vst.msk [vmem:[%s170_s24 + $0x30] sm:$0xff] %vm472_vm3, %v458_v50 }
 0x1b4   : > { %v662_v51 = vpop.f32.mrf.mxu1 }
 0x1b6   : > { %v463_v52 = vpop.f32.mrf.mxu1 }
 0x1b7   : > { %480 = vst.msk [vmem:[%s170_s24 + $0x38] sm:$0xff] %vm472_vm3, %v463_v52 }
 0x1b8   : > { %v665_v53 = vpop.f32.mrf.mxu1 }
 0x1ba   : > { %v468_v54 = vpop.f32.mrf.mxu1 }
 0x1bb   : > { %482 = vst.msk [vmem:[%s170_s24 + $0x40] sm:$0x3] %vm481_vm4, %v468_v54 }
 0x1bc   : > { %v668_v55 = vpop.f32.mrf.mxu1 }
 0x1bd PF: > { %s13_s12 = sadd.s32 1, %s687_s12  }
 0x1be   : > { %p10_p4 = scmp.ge.s32.totalorder %s13_s12, 4  }
 0x1c0   :  { %12 = sbr.rel (!%p10_p4) target bundleno = 1 (0x1), region = 62 }

</bundles_post_ra>
